<compile_context>
chip_gen: v5e
topology: v5e:2x2
jax: 0.10.0
libtpu: 0.0.40
codegen_flags: <defaults>
</compile_context>

<pallas_src>
import functools

import jax
import jax.numpy as jnp
from jax import lax
from jax.experimental import pallas as pl
from jax.experimental.pallas import tpu as pltpu


# ------------------------------ Pallas kernel ------------------------------- #

def _resblock_kernel(x_ref, w1_ref, b1_ref, w2_ref, b2_ref, o_ref, xp_scr,
                     *, s, L1, fused_shortcut):
    """Fused ResidualBlock1D forward for one (batch, L-tile) grid step.

    x_ref:  (L, C_in)   whole (unpadded) channels-last sequence of one batch
    w1_ref: (3*C_in, C_out)                 conv1 im2col weights (BN1 folded)
    w2_ref: (3*C_out [+ C_in], C_out)       conv2 [+ 1x1 shortcut] im2col weights
    b1_ref / b2_ref: (1, C_out)             folded biases (b2 includes bs)
    o_ref:  (TO, C_out) output tile
    xp_scr: (Lp, C_in)  per-batch zero-padded halo copy of x (VMEM scratch)
    """
    L, C_in = x_ref.shape
    TO, C_out = o_ref.shape
    Lp = xp_scr.shape[0]
    FP = s + 1                      # front halo (conv1 left pad)
    BP = Lp - L - FP                # back halo (conv1 right pad + partial-tile slack)
    R = TO + 2                      # conv1 rows needed (conv2 needs a +-1 halo)

    t = pl.program_id(1)
    o0 = t * TO                     # first output row of this tile

    # ---- in-kernel zero padding: build the halo'ed copy of x once per batch ----
    @pl.when(t == 0)
    def _():
        xp_scr[0:FP, :] = jnp.zeros((FP, C_in), jnp.float32)
        xp_scr[FP:FP + L, :] = x_ref[...].astype(jnp.float32)
        if BP:
            xp_scr[FP + L:, :] = jnp.zeros((BP, C_in), jnp.float32)

    base = s * o0
    if (s * TO) % 8 == 0:           # aligned sublane starts for the row gathers
        base = pl.multiple_of(base, 8)

    def xrows(start, n):
        # rows xp_scr[start + s*j, :] for j in [0, n)   (in-kernel stride)
        if s == 1:
            return xp_scr[pl.ds(start, n), :]
        return xp_scr[pl.ds(start, n, stride=s), :]

    # ---- conv1 (k=3, pad=1, stride=s) + BN1 + ReLU for rows r = o0-1 .. o0+TO ----
    # im2col: one (R, 3*C_in) x (3*C_in, C_out) MXU matmul instead of 3 small dots.
    x_im2col = jnp.concatenate([xrows(base + k, R) for k in range(3)], axis=1)
    h = jnp.dot(x_im2col, w1_ref[...].astype(jnp.float32),
                preferred_element_type=jnp.float32)
    h = jnp.maximum(h + b1_ref[...].astype(jnp.float32), 0.0)
    # rows outside [0, L1) are conv2's zero padding (or don't exist) -> mask to 0
    r_abs = o0 - 1 + lax.broadcasted_iota(jnp.int32, (R, 1), 0)
    h = jnp.where((r_abs >= 0) & (r_abs < L1), h, 0.0)

    # ---- conv2 (k=3, pad=1) + BN2 [+ fused 1x1-conv shortcut + BN_s + add] ----
    xs = xrows(base + s + 1, TO)            # x rows s*o for o = o0 .. o0+TO-1
    pieces = [h[k:k + TO, :] for k in range(3)]
    if fused_shortcut:
        pieces.append(xs)                   # shortcut folded into the same matmul
    y = jnp.dot(jnp.concatenate(pieces, axis=1), w2_ref[...].astype(jnp.float32),
                preferred_element_type=jnp.float32) + b2_ref[...].astype(jnp.float32)
    if not fused_shortcut:                  # identity shortcut (stride=1, C_in==C_out)
        y = y + xs

    # ---- final ReLU ----
    o_ref[...] = jnp.maximum(y, 0.0).astype(o_ref.dtype)


# -------------------------------- Wrappers ----------------------------------- #

def residual_block_1d_cl(x, params, *, stride=1, l_tile=256):
    """Fused ResidualBlock1D forward.  x: (B, L, C_in) channels-last."""
    B, L, C_in = x.shape
    w1, b1 = params["conv1"]                  # (3, C_in, C_out), (C_out,)  BN-folded
    w2, b2 = params["conv2"]                  # (3, C_out, C_out), (C_out,) BN-folded
    C_out = w1.shape[2]
    s = int(stride)
    L1 = (L - 1) // s + 1                     # PyTorch Conv1d(k=3, pad=1, stride=s)

    # Output L-tile: multiple of 8 (sublanes) unless it covers the whole output.
    TO = L1 if L1 <= l_tile else (l_tile // 8) * 8
    assert TO == L1 or TO % 8 == 0
    nT = pl.cdiv(L1, TO)

    FP = s + 1                                # front halo
    BP = max(0, s * nT * TO + 2 - L)          # back halo (covers taps + partial tile)
    Lp = L + FP + BP

    # im2col weight / bias layouts (single MXU matmul per conv).
    w1_2d = w1.reshape(3 * C_in, C_out)
    b1_2d = b1.reshape(1, C_out)
    w2_2d = w2.reshape(3 * C_out, C_out)

    fused = "shortcut" in params
    if fused:
        ws, bs = params["shortcut"]           # (1, C_in, C_out), (C_out,)  BN-folded
        # Fold the 1x1-conv shortcut into conv2's matmul: contract over 3*C_out + C_in.
        w2x = jnp.concatenate([w2_2d, ws.reshape(C_in, C_out)], axis=0)
        b2x = (b2 + bs).reshape(1, C_out)
    else:
        assert s == 1 and C_in == C_out
        w2x = w2_2d
        b2x = b2.reshape(1, C_out)

    x_spec = pl.BlockSpec((None, L, C_in), lambda b, t: (b, 0, 0))
    o_spec = pl.BlockSpec((None, TO, C_out), lambda b, t: (b, t, 0))
    w_spec = lambda shape: pl.BlockSpec(shape, lambda b, t: (0, 0))

    y = pl.pallas_call(
        functools.partial(_resblock_kernel, s=s, L1=L1, fused_shortcut=fused),
        out_shape=jax.ShapeDtypeStruct((B, L1, C_out), x.dtype),
        grid=(B, nT),
        in_specs=[x_spec,
                  w_spec(w1_2d.shape), w_spec(b1_2d.shape),
                  w_spec(w2x.shape), w_spec(b2x.shape)],
        out_specs=o_spec,
        scratch_shapes=[pltpu.VMEM((Lp, C_in), jnp.float32)],
        compiler_params=pltpu.CompilerParams(
            # Batch axis feeds megacore; the L-tile axis is "arbitrary" so the
            # per-batch halo copy under pl.when(t == 0) runs before later tiles.
            dimension_semantics=("parallel", "arbitrary"),
            vmem_limit_bytes=32 * 1024 * 1024,
        ),
    )(x, w1_2d, b1_2d, w2x, b2x)
    return y


def residual_block_1d(x_ncl, params, *, stride=1, l_tile=256):
    """PyTorch-layout wrapper: x (B, C_in, L) -> (B, C_out, L_out)."""
    y = residual_block_1d_cl(jnp.transpose(x_ncl, (0, 2, 1)), params,
                             stride=stride, l_tile=l_tile)
    return jnp.transpose(y, (0, 2, 1))


# --------------------------- Parameter construction -------------------------- #

_BN_EPS = 1e-5


def init_conv_bn(key, K, c_in, c_out):
    """Conv1d + BatchNorm1d params, BN (inference mode) folded into the conv."""
    k1, k2, k3, k4, k5, k6 = jax.random.split(key, 6)
    w = jax.random.normal(k1, (K, c_in, c_out), jnp.float32) / jnp.sqrt(K * c_in)
    b = 0.1 * jax.random.normal(k2, (c_out,), jnp.float32)
    gamma = 1.0 + 0.1 * jax.random.normal(k3, (c_out,), jnp.float32)
    beta = 0.1 * jax.random.normal(k4, (c_out,), jnp.float32)
    mean = 0.1 * jax.random.normal(k5, (c_out,), jnp.float32)
    var = jax.random.uniform(k6, (c_out,), jnp.float32, 0.5, 1.5)
    scale = gamma / jnp.sqrt(var + _BN_EPS)
    return w * scale[None, None, :], (b - mean) * scale + beta


def init_block(key, c_in, c_out, stride):
    k1, k2, k3 = jax.random.split(key, 3)
    p = {"conv1": init_conv_bn(k1, 3, c_in, c_out),
         "conv2": init_conv_bn(k2, 3, c_out, c_out)}
    if stride != 1 or c_in != c_out:
        p["shortcut"] = init_conv_bn(k3, 1, c_in, c_out)
    return p


# ------------------------------ Pure-JAX reference --------------------------- #

def _ref_conv1d(x, w, b, stride, padding):
    # x: (B, L, C_in) channels-last; w: (K, C_in, C_out); b: (C_out,)
    K = w.shape[0]
    L = x.shape[1]
    xp = jnp.pad(x, ((0, 0), (padding, padding), (0, 0)))
    L_out = (L + 2 * padding - K) // stride + 1
    out = jnp.zeros((x.shape[0], L_out, w.shape[2]), jnp.float32) + b
    for k in range(K):
        xs = lax.slice_in_dim(xp, k, k + stride * (L_out - 1) + 1,
                              stride=stride, axis=1)
        out = out + jnp.einsum("blc,co->blo", xs, w[k],
                               precision=lax.Precision.HIGHEST)
    return out


def _ref_block(x_ncl, p, stride):
    x = jnp.transpose(x_ncl, (0, 2, 1))
    if "shortcut" in p:
        identity = _ref_conv1d(x, p["shortcut"][0], p["shortcut"][1], stride, 0)
    else:
        identity = x
    h = jnp.maximum(_ref_conv1d(x, p["conv1"][0], p["conv1"][1], stride, 1), 0.0)
    h = _ref_conv1d(h, p["conv2"][0], p["conv2"][1], 1, 1)
    return jnp.transpose(jnp.maximum(h + identity, 0.0), (0, 2, 1))


# ----------------------------------- Main ------------------------------------ #

if __name__ == "__main__":
    key = jax.random.PRNGKey(0)
    kx, kp1, kp2 = jax.random.split(key, 3)

    B, C_in, L = 2, 8, 16
    x = jax.random.normal(kx, (B, C_in, L), jnp.float32)   # PyTorch (B, C, L) layout

    # Variant 1: identity shortcut (stride=1, in_channels == out_channels).
    p1 = init_block(kp1, C_in, C_in, stride=1)
    # Variant 2: 1x1-conv shortcut (stride=2, channel change) -> in-kernel stride path.
    p2 = init_block(kp2, C_in, 16, stride=2)

    @functools.partial(jax.jit, static_argnames=("stride", "l_tile"))
    def run(x, params, stride, l_tile):
        return residual_block_1d(x, params, stride=stride, l_tile=l_tile)

    y1 = jax.block_until_ready(run(x, p1, stride=1, l_tile=8))   # 2 L-tiles
    y2 = jax.block_until_ready(run(y1, p2, stride=2, l_tile=8))  # strided + fused shortcut

    r1 = _ref_block(x, p1, 1)
    r2 = _ref_block(r1, p2, 2)

    assert y1.shape == (B, C_in, L), y1.shape
    assert y2.shape == (B, 16, (L - 1) // 2 + 1), y2.shape
    assert bool(jnp.all(jnp.isfinite(y1))) and bool(jnp.all(jnp.isfinite(y2)))
    err = max(float(jnp.max(jnp.abs(y1 - r1))), float(jnp.max(jnp.abs(y2 - r2))))
    assert err < 5e-2, f"max abs error vs reference: {err}"
    print("KERNEL_OK")
</pallas_src>

<mosaic_0001>
module attributes {stable_mosaic.version = 11 : i64} {
  func.func @_resblock_kernel(%arg0: i32, %arg1: i32, %arg2: memref<1x16x8xf32, #tpu.memory_space<vmem>>, %arg3: memref<24x8xf32, #tpu.memory_space<vmem>>, %arg4: memref<1x8xf32, #tpu.memory_space<vmem>>, %arg5: memref<24x8xf32, #tpu.memory_space<vmem>>, %arg6: memref<1x8xf32, #tpu.memory_space<vmem>>, %arg7: memref<1x8x8xf32, #tpu.memory_space<vmem>>, %arg8: memref<20x8xf32, #tpu.memory_space<vmem>>) attributes {dimension_semantics = [#tpu.dimension_semantics<parallel>, #tpu.dimension_semantics<arbitrary>], iteration_bounds = array<i64: 2, 2>, scalar_prefetch = 0 : i64, scratch_operands = 1 : i64, tpu.core_type = #tpu.core_type<tc>, window_params = [{transform_indices = @transform_0, window_bounds = array<i64: 1, 16, 8>}, {pipeline_mode = #tpu.pipeline_mode<synchronous>, transform_indices = @transform_1, window_bounds = array<i64: 24, 8>}, {pipeline_mode = #tpu.pipeline_mode<synchronous>, transform_indices = @transform_2, window_bounds = array<i64: 1, 8>}, {pipeline_mode = #tpu.pipeline_mode<synchronous>, transform_indices = @transform_3, window_bounds = array<i64: 24, 8>}, {pipeline_mode = #tpu.pipeline_mode<synchronous>, transform_indices = @transform_4, window_bounds = array<i64: 1, 8>}, {transform_indices = @transform_5, window_bounds = array<i64: 1, 8, 8>}]} {
    %c8_i32 = arith.constant 8 : i32
    %0 = arith.muli %arg1, %c8_i32 : i32
    %c0_i32 = arith.constant 0 : i32
    %1 = arith.cmpi eq, %arg1, %c0_i32 : i32
    %2 = arith.extui %1 : i1 to i32
    %c0_i32_0 = arith.constant 0 : i32
    %3 = arith.cmpi ne, %2, %c0_i32_0 : i32
    scf.if %3 {
      %cst_25 = arith.constant 0.000000e+00 : f32
      %55 = vector.broadcast %cst_25 : f32 to vector<2x8xf32>
      %c0_26 = arith.constant 0 : index
      %c0_27 = arith.constant 0 : index
      %56 = vector.load %arg8[%c0_26, %c0_27] : memref<20x8xf32, #tpu.memory_space<vmem>>, vector<2x8xf32>
      tpu.vector_store %arg8[%c0_26, %c0_27], %55 {strides = array<i32>} : memref<20x8xf32, #tpu.memory_space<vmem>>, vector<2x8xf32>,
      %c0_28 = arith.constant 0 : index
      %c0_29 = arith.constant 0 : index
      %c0_30 = arith.constant 0 : index
      %57 = vector.load %arg2[%c0_28, %c0_29, %c0_30] : memref<1x16x8xf32, #tpu.memory_space<vmem>>, vector<1x16x8xf32>
      %58 = vector.shape_cast %57 : vector<1x16x8xf32> to vector<16x8xf32>
      %c2 = arith.constant 2 : index
      %c0_31 = arith.constant 0 : index
      %59 = vector.load %arg8[%c2, %c0_31] : memref<20x8xf32, #tpu.memory_space<vmem>>, vector<16x8xf32>
      tpu.vector_store %arg8[%c2, %c0_31], %58 {strides = array<i32>} : memref<20x8xf32, #tpu.memory_space<vmem>>, vector<16x8xf32>,
      %cst_32 = arith.constant 0.000000e+00 : f32
      %60 = vector.broadcast %cst_32 : f32 to vector<2x8xf32>
      %c18 = arith.constant 18 : index
      %c0_33 = arith.constant 0 : index
      %61 = vector.load %arg8[%c18, %c0_33] : memref<20x8xf32, #tpu.memory_space<vmem>>, vector<2x8xf32>
      tpu.vector_store %arg8[%c18, %c0_33], %60 {strides = array<i32>} : memref<20x8xf32, #tpu.memory_space<vmem>>, vector<2x8xf32>,
    } else {
    }
    %c1_i32 = arith.constant 1 : i32
    %4 = arith.muli %c1_i32, %0 : i32
    %5 = tpu.assume_multiple %4, 8 : i32
    %c0_i32_1 = arith.constant 0 : i32
    %6 = arith.addi %5, %c0_i32_1 : i32
    %7 = arith.index_cast %6 : i32 to index
    %c0 = arith.constant 0 : index
    %8 = vector.load %arg8[%7, %c0] : memref<20x8xf32, #tpu.memory_space<vmem>>, vector<10x8xf32>
    %c1_i32_2 = arith.constant 1 : i32
    %9 = arith.addi %5, %c1_i32_2 : i32
    %10 = arith.index_cast %9 : i32 to index
    %c0_3 = arith.constant 0 : index
    %11 = vector.load %arg8[%10, %c0_3] : memref<20x8xf32, #tpu.memory_space<vmem>>, vector<10x8xf32>
    %c2_i32 = arith.constant 2 : i32
    %12 = arith.addi %5, %c2_i32 : i32
    %13 = arith.index_cast %12 : i32 to index
    %c0_4 = arith.constant 0 : index
    %14 = vector.load %arg8[%13, %c0_4] : memref<20x8xf32, #tpu.memory_space<vmem>>, vector<10x8xf32>
    %15 = tpu.concatenate %8, %11, %14 in 1 : vector<10x8xf32>, vector<10x8xf32>, vector<10x8xf32> -> vector<10x24xf32>
    %c0_5 = arith.constant 0 : index
    %c0_6 = arith.constant 0 : index
    %16 = vector.load %arg3[%c0_5, %c0_6] : memref<24x8xf32, #tpu.memory_space<vmem>>, vector<24x8xf32>
    %cst = arith.constant dense<0.000000e+00> : vector<10x8xf32>
    %17 = tpu.matmul %15, %16, %cst {dimension_numbers = #tpu.dot_dimension_numbers<[1], [0], [0], [1], [0, 0, 1, 1], [], []>} : vector<10x24xf32>, vector<24x8xf32>, vector<10x8xf32> -> vector<10x8xf32>
    %c0_7 = arith.constant 0 : index
    %c0_8 = arith.constant 0 : index
    %18 = vector.load %arg4[%c0_7, %c0_8] : memref<1x8xf32, #tpu.memory_space<vmem>>, vector<1x8xf32>
    %19 = vector.broadcast %18 : vector<1x8xf32> to vector<10x8xf32>
    %20 = arith.addf %17, %19 : vector<10x8xf32>
    %cst_9 = arith.constant 0.000000e+00 : f32
    %21 = vector.broadcast %cst_9 : f32 to vector<10x8xf32>
    %22 = arith.maximumf %20, %21 : vector<10x8xf32>
    %c1_i32_10 = arith.constant 1 : i32
    %23 = arith.subi %0, %c1_i32_10 : i32
    %24 = tpu.iota {dimensions = array<i32: 0>} : vector<10x1xi32>
    %25 = vector.broadcast %23 : i32 to vector<10x1xi32>
    %26 = arith.addi %25, %24 : vector<10x1xi32>
    %c0_i32_11 = arith.constant 0 : i32
    %27 = vector.broadcast %c0_i32_11 : i32 to vector<10x1xi32>
    %28 = arith.cmpi sge, %26, %27 : vector<10x1xi32>
    %c16_i32 = arith.constant 16 : i32
    %29 = vector.broadcast %c16_i32 : i32 to vector<10x1xi32>
    %30 = arith.cmpi slt, %26, %29 : vector<10x1xi32>
    %31 = arith.andi %28, %30 : vector<10x1xi1>
    %cst_12 = arith.constant 0.000000e+00 : f32
    %32 = vector.shape_cast %31 : vector<10x1xi1> to vector<10x1xi1>
    %33 = vector.broadcast %32 : vector<10x1xi1> to vector<10x8xi1>
    %34 = vector.broadcast %cst_12 : f32 to vector<10x8xf32>
    %35 = arith.select %33, %22, %34 : vector<10x8xi1>, vector<10x8xf32>
    %c1_i32_13 = arith.constant 1 : i32
    %36 = arith.addi %5, %c1_i32_13 : i32
    %c1_i32_14 = arith.constant 1 : i32
    %37 = arith.addi %36, %c1_i32_14 : i32
    %38 = arith.index_cast %37 : i32 to index
    %c0_15 = arith.constant 0 : index
    %39 = vector.load %arg8[%38, %c0_15] : memref<20x8xf32, #tpu.memory_space<vmem>>, vector<8x8xf32>
    %40 = vector.extract_strided_slice %35 {offsets = [0, 0], sizes = [8, 8], strides = [1, 1]} : vector<10x8xf32> to vector<8x8xf32>
    %41 = vector.extract_strided_slice %35 {offsets = [1, 0], sizes = [8, 8], strides = [1, 1]} : vector<10x8xf32> to vector<8x8xf32>
    %42 = vector.extract_strided_slice %35 {offsets = [2, 0], sizes = [8, 8], strides = [1, 1]} : vector<10x8xf32> to vector<8x8xf32>
    %43 = tpu.concatenate %40, %41, %42 in 1 : vector<8x8xf32>, vector<8x8xf32>, vector<8x8xf32> -> vector<8x24xf32>
    %c0_16 = arith.constant 0 : index
    %c0_17 = arith.constant 0 : index
    %44 = vector.load %arg5[%c0_16, %c0_17] : memref<24x8xf32, #tpu.memory_space<vmem>>, vector<24x8xf32>
    %cst_18 = arith.constant dense<0.000000e+00> : vector<8x8xf32>
    %45 = tpu.matmul %43, %44, %cst_18 {dimension_numbers = #tpu.dot_dimension_numbers<[1], [0], [0], [1], [0, 0, 1, 1], [], []>} : vector<8x24xf32>, vector<24x8xf32>, vector<8x8xf32> -> vector<8x8xf32>
    %c0_19 = arith.constant 0 : index
    %c0_20 = arith.constant 0 : index
    %46 = vector.load %arg6[%c0_19, %c0_20] : memref<1x8xf32, #tpu.memory_space<vmem>>, vector<1x8xf32>
    %47 = vector.broadcast %46 : vector<1x8xf32> to vector<8x8xf32>
    %48 = arith.addf %45, %47 : vector<8x8xf32>
    %49 = arith.addf %48, %39 : vector<8x8xf32>
    %cst_21 = arith.constant 0.000000e+00 : f32
    %50 = vector.broadcast %cst_21 : f32 to vector<8x8xf32>
    %51 = arith.maximumf %49, %50 : vector<8x8xf32>
    %c0_22 = arith.constant 0 : index
    %c0_23 = arith.constant 0 : index
    %c0_24 = arith.constant 0 : index
    %52 = vector.load %arg7[%c0_22, %c0_23, %c0_24] : memref<1x8x8xf32, #tpu.memory_space<vmem>>, vector<1x8x8xf32>
    %53 = vector.shape_cast %52 : vector<1x8x8xf32> to vector<8x8xf32>
    %54 = vector.shape_cast %51 : vector<8x8xf32> to vector<1x8x8xf32>
    tpu.vector_store %arg7[%c0_22, %c0_23, %c0_24], %54 {strides = array<i32>} : memref<1x8x8xf32, #tpu.memory_space<vmem>>, vector<1x8x8xf32>,
    return
  }
  func.func @transform_0(%arg0: i32, %arg1: i32) -> (i32, i32, i32) {
    %c0_i32 = arith.constant 0 : i32
    %c0_i32_0 = arith.constant 0 : i32
    %c0_i32_1 = arith.constant 0 : i32
    return %arg0, %c0_i32, %c0_i32_0 : i32, i32, i32
  }
  func.func @transform_1(%arg0: i32, %arg1: i32) -> (i32, i32) {
    %c0_i32 = arith.constant 0 : i32
    %c0_i32_0 = arith.constant 0 : i32
    %c0_i32_1 = arith.constant 0 : i32
    return %c0_i32, %c0_i32_0 : i32, i32
  }
  func.func @transform_2(%arg0: i32, %arg1: i32) -> (i32, i32) {
    %c0_i32 = arith.constant 0 : i32
    %c0_i32_0 = arith.constant 0 : i32
    %c0_i32_1 = arith.constant 0 : i32
    return %c0_i32, %c0_i32_0 : i32, i32
  }
  func.func @transform_3(%arg0: i32, %arg1: i32) -> (i32, i32) {
    %c0_i32 = arith.constant 0 : i32
    %c0_i32_0 = arith.constant 0 : i32
    %c0_i32_1 = arith.constant 0 : i32
    return %c0_i32, %c0_i32_0 : i32, i32
  }
  func.func @transform_4(%arg0: i32, %arg1: i32) -> (i32, i32) {
    %c0_i32 = arith.constant 0 : i32
    %c0_i32_0 = arith.constant 0 : i32
    %c0_i32_1 = arith.constant 0 : i32
    return %c0_i32, %c0_i32_0 : i32, i32
  }
  func.func @transform_5(%arg0: i32, %arg1: i32) -> (i32, i32, i32) {
    %c0_i32 = arith.constant 0 : i32
    %c0_i32_0 = arith.constant 0 : i32
    return %arg0, %arg1, %c0_i32 : i32, i32, i32
  }
}

</mosaic_0001>

<bundles_post_ra>
// kernel: run.1
= control target key start
LH: loop header
LB: loop body
LE: loop exit
PB: predicated region body
PF: predicated region fallthrough
CT: control target
= control target key end

     0   :  { %s635_s18 = smov 0   ;;  %s637_s19 = smov 0   ;;  %s743_s0 = inlined_call_operand.vmem [shape: f32[2,16,8], index: 0, kind: input, shape index: {}]   ;;  %s744_s1 = inlined_call_operand.vmem [shape: f32[24,8], index: 1, kind: input, shape index: {}]   ;;  %s745_s2 = inlined_call_operand.vmem [shape: f32[1,8], index: 2, kind: input, shape index: {}]   ;;  %s746_s3 = inlined_call_operand.vmem [shape: f32[24,8], index: 3, kind: input, shape index: {}]   ;;  %s747_s4 = inlined_call_operand.vmem [shape: f32[1,8], index: 4, kind: input, shape index: {}]   ;;  %s748_s5 = inlined_call_operand.vmem [shape: f32[2,16,8], index: 5, kind: output, shape index: {}]  }
   0x1   :  { %s639_s20 = smov 0   ;;  %s641_s21 = smov 0  }
   0x2   :  { %s643_s22 = smov 0  }
   0x3 LB: > { %s24_s23 = sadd.s32 1, %s592_s20  ;;  %s27_s24 = sadd.s32 1, %s596_s21  ;;  %s600_s22 = sphi %s643_s22, %s15_s22   ;;  %s596_s21 = sphi %s641_s21, %s752_s21   ;;  %s592_s20 = sphi %s639_s20, %s751_s20   ;;  %s588_s19 = sphi %s637_s19, %s750_s19   ;;  %s584_s18 = sphi %s635_s18, %s749_s18  }
   0x4   : > { %p25_p0 = scmp.ge.s32.totalorder %s24_s23, 2  ;;  %p493_p1 = scmp.ge.s32.totalorder %s600_s22, 1 }
   0x5   : > { %p201_p2 = scmp.lt.s32.totalorder %s600_s22, 5 }
   0x6   : > { %s754_s23 = smov (%p25_p0, %s24_s23), 0  ;;  %s756_s24 = smov (!%p25_p0, %s27_s24), %s596_s21 }
   0x7   : > { %p202_p3 = pnand %p493_p1, %p201_p2  ;;  %p29_p4 = scmp.ge.s32.totalorder %s756_s24, 2 }
   0x8   : > { %p232_p5 = scmp.lt.s32.totalorder (!%p202_p3), %s588_s19, 1  ;;  %p239_p6 = scmp.lt.s32.totalorder (!%p202_p3), %s584_s18, 1 }
   0x9   : > { %s758_s24 = smov (%p29_p4, %s756_s24), 0  ;;  %205 = sbr.rel (%p202_p3) target bundleno = 532 (0x214), region = 40 }
   0xa   : > { %s498_s25 = sshll.u32 (!%p202_p3), %s584_s18, 3  ;;  %p499_p7 = scmp.ne.s32.totalorder (!%p202_p3), %s584_s18, 0 }
   0xe   : > { %s760_s19 = smov (!%p232_p5, %s588_s19), 1 }
   0xf   : > { %s240_s26 = scalar_select %p239_p6, %s584_s18, 1 }
  0x10   : > { %s513_s27 = sshll.u32 %s760_s19, 4  ;;  %s496_s28 = sshll.u32 %s760_s19, 1 }
  0x11   : > { %s236_s6 = scalar_lea.vmem %s743_s0, %s513_s27  ;;  %s242_s7 = sadd.s32 %s496_s28, %s240_s26 }
  0x12   : > { %s497_s8 = sshll.u32 %s242_s7, 3  ;;  %249 = sbr.rel (%p499_p7) target bundleno = 28 (0x1c), region = 44 }
  0x13   : > { %s676_s11 = scalar_lea.vmem %s748_s5, %s497_s8 }
  0x17   : > { %vm250_vm0 = vcmask 58368   ;;  %v252_v0 = vld [vmem:[%s236_s6] sm:$0xff]  ;;  %vm254_vm1 = vcmask 64512   ;;  %v602_v1 = vmov 0.0   ;;  %v253_v2 = vld [vmem:[%s236_s6 + $0x8] sm:$0xff] }
  0x18   : > { %251 = vst.msk [vmem:[#allocation2] sm:$0x3] %vm250_vm0, %v602_v1 }
  0x19   : > { %257 = vst.msk [vmem:[#allocation2 + $0x12] sm:$0x3] %vm250_vm0, %v602_v1 }
  0x1a   : > { %255 = vst.msk [vmem:[#allocation2 + $0x2] sm:$0xff] %vm254_vm1, %v252_v0 }
  0x1b   : > { %256 = vst.msk [vmem:[#allocation2 + $0xa] sm:$0xff] %vm254_vm1, %v253_v2 }
  0x1c PF: > { %s258_s12 = scalar_lea.vmem [#allocation2], %s498_s25  ;;  %s603_s13 = smov 8   ;;  %v293_v7 = vld [vmem:[%s744_s1 + $0x10] sm:$0xff]  ;;  %v292_v8 = vld [vmem:[%s744_s1 + $0x8] sm:$0xff]  ;;  %v291_v9 = vld [vmem:[%s744_s1] sm:$0xff]  ;;  %vm285_vm2 = vcmask 64512   ;;  %v331_v20 = vlaneseq }
  0x1d   : > { %s604_s14 = smov 16   ;;  %318 = vmatpush.msra.mxu0 %v293_v7  ;;  %514 = vmatpush.msra.mxu2 %v293_v7  ;;  %vm288_vm3 = vcmask 130048   ;;  %vm298_vm4 = vcmask 195584   ;;  %s508_s28 = sadd.s32 4294967295, %s498_s25  ;;  %v560_v23 = vld [vmem:[%s745_s2] ss:$0 sm:$0xff] }
  0x1e   : > { %v332_v21 = vshrl.u32 %v331_v20, 7  ;;  %v334_v22 = vstv %s508_s28  ;;  %vm352_vm11 = vcmask 1046528   ;;  %vm359_vm12 = vcmask 1045504   ;;  %v370_v41 = vld [vmem:[%s746_s3 + $0x10] sm:$0xff]  ;;  %v369_v42 = vld [vmem:[%s746_s3 + $0x8] sm:$0xff]  ;;  %v368_v43 = vld [vmem:[%s746_s3] sm:$0xff] }
  0x1f   : > { %319 = vmatpush.msra.mxu0 %v292_v8  ;;  %515 = vmatpush.msra.mxu2 %v292_v8  ;;  %v561_v48 = vld [vmem:[%s747_s4] ss:$0 sm:$0xff] }
  0x20   : > { %v333_v24 = vadd.s32 8, %v332_v21  ;;  %v335_v25 = vadd.s32 %v334_v22, %v332_v21  ;;  %391 = vmatpush.msra.mxu1 %v370_v41 }
  0x21   : > { %320 = vmatpush.msra.mxu0 %v291_v9  ;;  %516 = vmatpush.msra.mxu2 %v291_v9 }
  0x22   : > { %v502_v3 = vld [vmem:[%s258_s12 + $0x9] sm:$0x3]  ;;  %v501_v4 = vld [vmem:[%s258_s12 + $0x1] sm:$0xff]  ;;  %v336_v28 = vadd.s32 %v334_v22, %v333_v24  ;;  %vm337_vm5 = vcmp.ge.s32.totalorder %v335_v25, 0  ;;  %vm339_vm6 = vcmp.lt.s32.totalorder %v335_v25, 16  ;;  %392 = vmatpush.msra.mxu1 %v369_v42 }
  0x23   : > { %273 = vrot.lane.b32.xlu0 %v502_v3, %s603_s13  ;;  %271 = vrot.lane.b32.xlu1 %v501_v4, %s603_s13  ;;  %v505_v5 = vld [vmem:[%s258_s12 + $0xa] sm:$0x3]  ;;  %v683_v6 = vld [vmem:[%s258_s12 + $0x2] sm:$0xff]  ;;  %vm341_vm9 = vmand %vm337_vm5, %vm339_vm6 }
  0x24   : > { %v259_v12 = vld [vmem:[%s258_s12] sm:$0xff]  ;;  %v260_v13 = vld [vmem:[%s258_s12 + $0x8] sm:$0x3]  ;;  %vm338_vm7 = vcmp.ge.s32.totalorder %v336_v28, 0  ;;  %vm340_vm8 = vcmp.lt.s32.totalorder %v336_v28, 16  ;;  %393 = vmatpush.msra.mxu1 %v368_v43 }
  0x25   : > { %vm342_vm10 = vmand %vm338_vm7, %vm340_vm8 }
  0x2b   : > { %281 = vrot.lane.b32.xlu0 %v505_v5, %s604_s14  ;;  %279 = vrot.lane.b32.xlu1 %v683_v6, %s604_s14 }
  0x95   : > { %v274_v10 = vpop.permute.xlu0 %273  ;;  %v272_v11 = vpop.permute.xlu1 %271 }
  0x96   : > { %v286_v14 = vsel %vm285_vm2, %v259_v12, %v272_v11  ;;  %v287_v15 = vsel %vm285_vm2, %v260_v13, %v274_v10 }
  0x9d   : > { %v282_v16 = vpop.permute.xlu0 %281  ;;  %v280_v17 = vpop.permute.xlu1 %279 }
  0x9e   : > { %v289_v18 = vsel %vm288_vm3, %v286_v14, %v280_v17  ;;  %v290_v19 = vsel %vm288_vm3, %v287_v15, %v282_v16 }
  0x9f   : > { %506 = vmatmul.msk.f32.vlgmr.msra.gmra.mxu0 %vm298_vm4, %v289_v18  ;;  %507 = vmatmul.msk.f32.vlgmr.msra.gmra.mxu2 %vm298_vm4, %v290_v19 }
 0x11c   : > { %v322_v26 = vpop.f32.mrf.mxu0 }
 0x11d   : > { %v323_v27 = vadd.f32 %v560_v23, %v322_v26 }
 0x11f   : > { %v328_v29 = vmax.f32 %v323_v27, 0.0 }
 0x121   : > { %v347_v32 = vsel %vm341_vm9, %v328_v29, 0.0 }
 0x122   : > { %v325_v30 = vpop.f32.mrf.mxu2  ;;  %v353_v36 = vrot.slane %v347_v32, 1  ;;  %v360_v39 = vrot.slane %v347_v32, 2 }
 0x123   : > { %v326_v31 = vadd.f32 %v560_v23, %v325_v30 }
 0x125   : > { %v329_v33 = vmax.f32 %v326_v31, 0.0 }
 0x127   : > { %v348_v34 = vsel %vm342_vm10, %v329_v33, 0.0 }
 0x128   : > { %v354_v35 = vrot.slane %v348_v34, 1  ;;  %v361_v38 = vrot.slane %v348_v34, 2 }
 0x12a   : > { %v355_v37 = vsel %vm352_vm11, %v353_v36, %v354_v35  ;;  %v362_v40 = vsel %vm359_vm12, %v360_v39, %v361_v38 }
 0x12b   : > { %356 = vrot.lane.b32.xlu2 %v355_v37, %s603_s13 }
 0x133   : > { %363 = vrot.lane.b32.xlu2 %v362_v40, %s604_s14 }
 0x185   : > { %v357_v44 = vpop.permute.xlu2 %356 }
 0x186   : > { %v366_v45 = vsel %vm285_vm2, %v347_v32, %v357_v44 }
 0x18d   : > { %v364_v46 = vpop.permute.xlu2 %363 }
 0x18e   : > { %v367_v47 = vsel %vm288_vm3, %v366_v45, %v364_v46 }
 0x18f   : > { %510 = vmatmul.msk.f32.vlgmr.msra.gmra.mxu1 %vm298_vm4, %v367_v47 }
 0x20c   : > { %v395_v49 = vpop.f32.mrf.mxu1 }
 0x20d   : > { %v396_v50 = vadd.f32 %v561_v48, %v395_v49 }
 0x20f   : > { %v398_v51 = vadd.f32 %v683_v6, %v396_v50 }
 0x211   : > { %v399_v52 = vmax.f32 %v398_v51, 0.0 }
 0x213   : > { %400 = vst.msk [vmem:[%s676_s11] sm:$0xff] %vm285_vm2, %v399_v52 }
 0x214 PF: > { %s15_s22 = sadd.s32 1, %s600_s22   ;;  %s749_s18 = smov %s592_s20 }
 0x215   : > { %p12_p8 = scmp.ge.s32.totalorder %s15_s22, 6   ;;  %s750_s19 = smov %s596_s21 }
 0x216   : > { %s751_s20 = smov %s754_s23  ;;  %s752_s21 = smov %s758_s24 }
 0x217   :  { %14 = sbr.rel (!%p12_p8) target bundleno = 3 (0x3), region = 77 }

</bundles_post_ra>
